<compile_context>
chip_gen: v5e
topology: v5e:2x2
jax: 0.10.0
libtpu: 0.0.40
codegen_flags: <defaults>
</compile_context>

<pallas_src>
import jax
import jax.numpy as jnp
import numpy as np
from jax.experimental import pallas as pl
from jax.experimental.pallas import tpu as pltpu

EPS = 1e-5
NEG_SLOPE = 0.2


def up_kernel(x_ref, w_ref, o_ref):
    # x_ref: (B, Cin, HW)   w_ref: (K, Cin) with K = 4*Cout   o_ref: (B, K, HW)
    w = w_ref[...]                                   # (K, Cin), resident
    B = x_ref.shape[0]
    K = o_ref.shape[1]
    HW = o_ref.shape[2]
    Cout = K // 4
    inv_n = 1.0 / float(4 * HW)                      # InstanceNorm over 2H x 2W = 4*HW elems

    for b in range(B):                               # B is small & static
        x = x_ref[b]                                 # (Cin, HW), lane-dense
        # Fused transposed conv: all 4 kernel taps in a single MXU call.
        y = jnp.dot(w, x, preferred_element_type=jnp.float32)          # (K, HW)

        # One-pass InstanceNorm stats: per-row (tap,channel) sums over HW ...
        s1 = jnp.sum(y, axis=1, keepdims=True)                          # (K, 1)
        s2 = jnp.sum(y * y, axis=1, keepdims=True)                      # (K, 1)
        # ... then combine the 4 tap rows belonging to each output channel.
        s1c = (s1[0:Cout] + s1[Cout:2 * Cout]
               + s1[2 * Cout:3 * Cout] + s1[3 * Cout:4 * Cout])         # (Cout, 1)
        s2c = (s2[0:Cout] + s2[Cout:2 * Cout]
               + s2[2 * Cout:3 * Cout] + s2[3 * Cout:4 * Cout])         # (Cout, 1)

        mean = s1c * inv_n                                              # (Cout, 1)
        var = s2c * inv_n - mean * mean                                 # E[y^2] - mean^2
        scale = jax.lax.rsqrt(var + EPS)                                # (Cout, 1)  (EUP)

        # Replicate per-channel stats back onto the 4 tap rows.
        mean_k = jnp.concatenate([mean, mean, mean, mean], axis=0)      # (K, 1)
        scale_k = jnp.concatenate([scale, scale, scale, scale], axis=0)  # (K, 1)

        yn = (y - mean_k) * scale_k
        yn = jnp.where(yn >= 0.0, yn, NEG_SLOPE * yn)                   # LeakyReLU(0.2)
        o_ref[b] = yn.astype(o_ref.dtype)                               # lane-dense store


def _pick_batch_block(n, per_sample_bytes, budget_bytes=8 << 20, max_b=8):
    """Largest divisor of n (<= max_b) whose double-buffered tile fits the budget."""
    best = 1
    for b in range(1, min(n, max_b) + 1):
        if n % b == 0 and 2 * b * per_sample_bytes <= budget_bytes:
            best = b
    return best


def up_forward(x_nchw, w_conv):
    """x_nchw: (N, Cin, H, W); w_conv: (Cin, Cout, 2, 2) (PyTorch ConvTranspose2d layout).
    Returns (N, Cout, 2H, 2W)."""
    N, Cin, H, W = x_nchw.shape
    Cout = w_conv.shape[1]
    HW = H * W
    K = 4 * Cout

    # NCHW -> (N, Cin, HW): pure reshape, no input transpose; HW is the lane dim.
    x_flat = x_nchw.reshape(N, Cin, HW)
    # (Cin, Cout, 2, 2) -> (K, Cin), row r = (di*2 + dj)*Cout + co.
    w_k = jnp.transpose(w_conv, (2, 3, 1, 0)).reshape(K, Cin)

    per_sample_bytes = 4 * (Cin * HW + K * HW)       # f32 in-tile + out-tile per sample
    B = _pick_batch_block(N, per_sample_bytes)
    grid = (N // B,)

    cost = pl.CostEstimate(
        flops=2 * N * K * Cin * HW + 6 * N * K * HW,
        transcendentals=N * Cout,
        bytes_accessed=4 * (N * Cin * HW + K * Cin + N * K * HW),
    )

    out = pl.pallas_call(
        up_kernel,
        out_shape=jax.ShapeDtypeStruct((N, K, HW), jnp.float32),
        grid_spec=pltpu.PrefetchScalarGridSpec(
            num_scalar_prefetch=0,
            grid=grid,
            in_specs=[
                pl.BlockSpec((B, Cin, HW), lambda n: (n, 0, 0)),
                pl.BlockSpec((K, Cin), lambda n: (0, 0)),   # weights resident across grid
            ],
            out_specs=pl.BlockSpec((B, K, HW), lambda n: (n, 0, 0)),
        ),
        compiler_params=pltpu.CompilerParams(dimension_semantics=("parallel",)),
        cost_estimate=cost,
    )(x_flat, w_k)

    # (N, K, HW) -> (N, di, dj, Cout, H, W) -> (N, Cout, H, di, W, dj) -> (N, Cout, 2H, 2W)
    out = out.reshape(N, 2, 2, Cout, H, W)
    out = jnp.transpose(out, (0, 3, 4, 1, 5, 2)).reshape(N, Cout, 2 * H, 2 * W)
    return out


def up_reference(x_nchw, w_conv):
    """Pure-JAX reference of ConvTranspose2d(k=2,s=2,no bias) + InstanceNorm2d + LeakyReLU."""
    N, Cin, H, W = x_nchw.shape
    Cout = w_conv.shape[1]
    # y[n, co, 2h+di, 2w+dj] = sum_ci x[n,ci,h,w] * w[ci,co,di,dj]
    y = jnp.einsum("nihw,iodk->nohdwk", x_nchw, w_conv).reshape(N, Cout, 2 * H, 2 * W)
    mean = jnp.mean(y, axis=(2, 3), keepdims=True)
    var = jnp.mean((y - mean) ** 2, axis=(2, 3), keepdims=True)
    y = (y - mean) * jax.lax.rsqrt(var + EPS)
    return jnp.where(y >= 0, y, NEG_SLOPE * y)


if __name__ == "__main__":
    key = jax.random.PRNGKey(0)
    k_x, k_w = jax.random.split(key)

    N, Cin, Cout, H, W = 2, 8, 4, 16, 16
    x = jax.random.normal(k_x, (N, Cin, H, W), dtype=jnp.float32)
    # PyTorch ConvTranspose2d weight shape: (Cin, Cout, kH, kW)
    w = 0.1 * jax.random.normal(k_w, (Cin, Cout, 2, 2), dtype=jnp.float32)

    out = jax.block_until_ready(up_forward(x, w))
    ref = jax.block_until_ready(up_reference(x, w))

    assert out.shape == (N, Cout, 2 * H, 2 * W)
    np.testing.assert_allclose(np.asarray(out), np.asarray(ref), rtol=1e-4, atol=1e-4)

    print("KERNEL_OK")
</pallas_src>

<mosaic_0001>
module attributes {stable_mosaic.version = 11 : i64} {
  func.func @up_kernel(%arg0: i32, %arg1: memref<2x8x256xf32, #tpu.memory_space<vmem>>, %arg2: memref<16x8xf32, #tpu.memory_space<vmem>>, %arg3: memref<2x16x256xf32, #tpu.memory_space<vmem>>) attributes {dimension_semantics = [#tpu.dimension_semantics<parallel>], iteration_bounds = array<i64: 1>, scalar_prefetch = 0 : i64, scratch_operands = 0 : i64, tpu.core_type = #tpu.core_type<tc>, window_params = [{transform_indices = @transform_0, window_bounds = array<i64: 2, 8, 256>}, {pipeline_mode = #tpu.pipeline_mode<synchronous>, transform_indices = @transform_1, window_bounds = array<i64: 16, 8>}, {transform_indices = @transform_2, window_bounds = array<i64: 2, 16, 256>}]} {
    %c0 = arith.constant 0 : index
    %c0_0 = arith.constant 0 : index
    %0 = vector.load %arg2[%c0, %c0_0] : memref<16x8xf32, #tpu.memory_space<vmem>>, vector<16x8xf32>
    %c0_1 = arith.constant 0 : index
    %c0_2 = arith.constant 0 : index
    %c0_3 = arith.constant 0 : index
    %1 = vector.load %arg1[%c0_1, %c0_2, %c0_3] : memref<2x8x256xf32, #tpu.memory_space<vmem>>, vector<1x8x256xf32>
    %2 = vector.shape_cast %1 : vector<1x8x256xf32> to vector<8x256xf32>
    %cst = arith.constant dense<0.000000e+00> : vector<16x256xf32>
    %3 = tpu.matmul %0, %2, %cst {dimension_numbers = #tpu.dot_dimension_numbers<[1], [0], [0], [1], [0, 0, 1, 1], [], []>} : vector<16x8xf32>, vector<8x256xf32>, vector<16x256xf32> -> vector<16x256xf32>
    %cst_4 = arith.constant dense<0.000000e+00> : vector<16xf32>
    %4 = vector.multi_reduction <add>, %3, %cst_4 [1] : vector<16x256xf32> to vector<16xf32>
    %5 = vector.shape_cast %4 : vector<16xf32> to vector<16x1xf32>
    %6 = arith.mulf %3, %3 : vector<16x256xf32>
    %cst_5 = arith.constant dense<0.000000e+00> : vector<16xf32>
    %7 = vector.multi_reduction <add>, %6, %cst_5 [1] : vector<16x256xf32> to vector<16xf32>
    %8 = vector.shape_cast %7 : vector<16xf32> to vector<16x1xf32>
    %9 = vector.extract_strided_slice %5 {offsets = [0, 0], sizes = [4, 1], strides = [1, 1]} : vector<16x1xf32> to vector<4x1xf32>
    %10 = vector.extract_strided_slice %5 {offsets = [4, 0], sizes = [4, 1], strides = [1, 1]} : vector<16x1xf32> to vector<4x1xf32>
    %11 = arith.addf %9, %10 : vector<4x1xf32>
    %12 = vector.extract_strided_slice %5 {offsets = [8, 0], sizes = [4, 1], strides = [1, 1]} : vector<16x1xf32> to vector<4x1xf32>
    %13 = arith.addf %11, %12 : vector<4x1xf32>
    %14 = vector.extract_strided_slice %5 {offsets = [12, 0], sizes = [4, 1], strides = [1, 1]} : vector<16x1xf32> to vector<4x1xf32>
    %15 = arith.addf %13, %14 : vector<4x1xf32>
    %16 = vector.extract_strided_slice %8 {offsets = [0, 0], sizes = [4, 1], strides = [1, 1]} : vector<16x1xf32> to vector<4x1xf32>
    %17 = vector.extract_strided_slice %8 {offsets = [4, 0], sizes = [4, 1], strides = [1, 1]} : vector<16x1xf32> to vector<4x1xf32>
    %18 = arith.addf %16, %17 : vector<4x1xf32>
    %19 = vector.extract_strided_slice %8 {offsets = [8, 0], sizes = [4, 1], strides = [1, 1]} : vector<16x1xf32> to vector<4x1xf32>
    %20 = arith.addf %18, %19 : vector<4x1xf32>
    %21 = vector.extract_strided_slice %8 {offsets = [12, 0], sizes = [4, 1], strides = [1, 1]} : vector<16x1xf32> to vector<4x1xf32>
    %22 = arith.addf %20, %21 : vector<4x1xf32>
    %cst_6 = arith.constant 9.765625E-4 : f32
    %23 = vector.broadcast %cst_6 : f32 to vector<4x1xf32>
    %24 = arith.mulf %15, %23 : vector<4x1xf32>
    %cst_7 = arith.constant 9.765625E-4 : f32
    %25 = vector.broadcast %cst_7 : f32 to vector<4x1xf32>
    %26 = arith.mulf %22, %25 : vector<4x1xf32>
    %27 = arith.mulf %24, %24 : vector<4x1xf32>
    %28 = arith.subf %26, %27 : vector<4x1xf32>
    %cst_8 = arith.constant 9.99999974E-6 : f32
    %29 = vector.broadcast %cst_8 : f32 to vector<4x1xf32>
    %30 = arith.addf %28, %29 : vector<4x1xf32>
    %31 = math.rsqrt %30 : vector<4x1xf32>
    %32 = tpu.concatenate %24, %24, %24, %24 in 0 : vector<4x1xf32>, vector<4x1xf32>, vector<4x1xf32>, vector<4x1xf32> -> vector<16x1xf32>
    %33 = tpu.concatenate %31, %31, %31, %31 in 0 : vector<4x1xf32>, vector<4x1xf32>, vector<4x1xf32>, vector<4x1xf32> -> vector<16x1xf32>
    %34 = vector.broadcast %32 : vector<16x1xf32> to vector<16x256xf32>
    %35 = arith.subf %3, %34 : vector<16x256xf32>
    %36 = vector.broadcast %33 : vector<16x1xf32> to vector<16x256xf32>
    %37 = arith.mulf %35, %36 : vector<16x256xf32>
    %cst_9 = arith.constant 0.000000e+00 : f32
    %38 = vector.broadcast %cst_9 : f32 to vector<16x256xf32>
    %39 = arith.cmpf oge, %37, %38 : vector<16x256xf32>
    %cst_10 = arith.constant 2.000000e-01 : f32
    %40 = vector.broadcast %cst_10 : f32 to vector<16x256xf32>
    %41 = arith.mulf %40, %37 : vector<16x256xf32>
    %42 = arith.select %39, %37, %41 : vector<16x256xi1>, vector<16x256xf32>
    %c0_11 = arith.constant 0 : index
    %c0_12 = arith.constant 0 : index
    %c0_13 = arith.constant 0 : index
    %43 = vector.load %arg3[%c0_11, %c0_12, %c0_13] : memref<2x16x256xf32, #tpu.memory_space<vmem>>, vector<1x16x256xf32>
    %44 = vector.shape_cast %43 : vector<1x16x256xf32> to vector<16x256xf32>
    %45 = vector.shape_cast %42 : vector<16x256xf32> to vector<1x16x256xf32>
    tpu.vector_store %arg3[%c0_11, %c0_12, %c0_13], %45 {strides = array<i32>} : memref<2x16x256xf32, #tpu.memory_space<vmem>>, vector<1x16x256xf32>,
    %c1 = arith.constant 1 : index
    %c0_14 = arith.constant 0 : index
    %c0_15 = arith.constant 0 : index
    %46 = vector.load %arg1[%c1, %c0_14, %c0_15] : memref<2x8x256xf32, #tpu.memory_space<vmem>>, vector<1x8x256xf32>
    %47 = vector.shape_cast %46 : vector<1x8x256xf32> to vector<8x256xf32>
    %cst_16 = arith.constant dense<0.000000e+00> : vector<16x256xf32>
    %48 = tpu.matmul %0, %47, %cst_16 {dimension_numbers = #tpu.dot_dimension_numbers<[1], [0], [0], [1], [0, 0, 1, 1], [], []>} : vector<16x8xf32>, vector<8x256xf32>, vector<16x256xf32> -> vector<16x256xf32>
    %cst_17 = arith.constant dense<0.000000e+00> : vector<16xf32>
    %49 = vector.multi_reduction <add>, %48, %cst_17 [1] : vector<16x256xf32> to vector<16xf32>
    %50 = vector.shape_cast %49 : vector<16xf32> to vector<16x1xf32>
    %51 = arith.mulf %48, %48 : vector<16x256xf32>
    %cst_18 = arith.constant dense<0.000000e+00> : vector<16xf32>
    %52 = vector.multi_reduction <add>, %51, %cst_18 [1] : vector<16x256xf32> to vector<16xf32>
    %53 = vector.shape_cast %52 : vector<16xf32> to vector<16x1xf32>
    %54 = vector.extract_strided_slice %50 {offsets = [0, 0], sizes = [4, 1], strides = [1, 1]} : vector<16x1xf32> to vector<4x1xf32>
    %55 = vector.extract_strided_slice %50 {offsets = [4, 0], sizes = [4, 1], strides = [1, 1]} : vector<16x1xf32> to vector<4x1xf32>
    %56 = arith.addf %54, %55 : vector<4x1xf32>
    %57 = vector.extract_strided_slice %50 {offsets = [8, 0], sizes = [4, 1], strides = [1, 1]} : vector<16x1xf32> to vector<4x1xf32>
    %58 = arith.addf %56, %57 : vector<4x1xf32>
    %59 = vector.extract_strided_slice %50 {offsets = [12, 0], sizes = [4, 1], strides = [1, 1]} : vector<16x1xf32> to vector<4x1xf32>
    %60 = arith.addf %58, %59 : vector<4x1xf32>
    %61 = vector.extract_strided_slice %53 {offsets = [0, 0], sizes = [4, 1], strides = [1, 1]} : vector<16x1xf32> to vector<4x1xf32>
    %62 = vector.extract_strided_slice %53 {offsets = [4, 0], sizes = [4, 1], strides = [1, 1]} : vector<16x1xf32> to vector<4x1xf32>
    %63 = arith.addf %61, %62 : vector<4x1xf32>
    %64 = vector.extract_strided_slice %53 {offsets = [8, 0], sizes = [4, 1], strides = [1, 1]} : vector<16x1xf32> to vector<4x1xf32>
    %65 = arith.addf %63, %64 : vector<4x1xf32>
    %66 = vector.extract_strided_slice %53 {offsets = [12, 0], sizes = [4, 1], strides = [1, 1]} : vector<16x1xf32> to vector<4x1xf32>
    %67 = arith.addf %65, %66 : vector<4x1xf32>
    %cst_19 = arith.constant 9.765625E-4 : f32
    %68 = vector.broadcast %cst_19 : f32 to vector<4x1xf32>
    %69 = arith.mulf %60, %68 : vector<4x1xf32>
    %cst_20 = arith.constant 9.765625E-4 : f32
    %70 = vector.broadcast %cst_20 : f32 to vector<4x1xf32>
    %71 = arith.mulf %67, %70 : vector<4x1xf32>
    %72 = arith.mulf %69, %69 : vector<4x1xf32>
    %73 = arith.subf %71, %72 : vector<4x1xf32>
    %cst_21 = arith.constant 9.99999974E-6 : f32
    %74 = vector.broadcast %cst_21 : f32 to vector<4x1xf32>
    %75 = arith.addf %73, %74 : vector<4x1xf32>
    %76 = math.rsqrt %75 : vector<4x1xf32>
    %77 = tpu.concatenate %69, %69, %69, %69 in 0 : vector<4x1xf32>, vector<4x1xf32>, vector<4x1xf32>, vector<4x1xf32> -> vector<16x1xf32>
    %78 = tpu.concatenate %76, %76, %76, %76 in 0 : vector<4x1xf32>, vector<4x1xf32>, vector<4x1xf32>, vector<4x1xf32> -> vector<16x1xf32>
    %79 = vector.broadcast %77 : vector<16x1xf32> to vector<16x256xf32>
    %80 = arith.subf %48, %79 : vector<16x256xf32>
    %81 = vector.broadcast %78 : vector<16x1xf32> to vector<16x256xf32>
    %82 = arith.mulf %80, %81 : vector<16x256xf32>
    %cst_22 = arith.constant 0.000000e+00 : f32
    %83 = vector.broadcast %cst_22 : f32 to vector<16x256xf32>
    %84 = arith.cmpf oge, %82, %83 : vector<16x256xf32>
    %cst_23 = arith.constant 2.000000e-01 : f32
    %85 = vector.broadcast %cst_23 : f32 to vector<16x256xf32>
    %86 = arith.mulf %85, %82 : vector<16x256xf32>
    %87 = arith.select %84, %82, %86 : vector<16x256xi1>, vector<16x256xf32>
    %c1_24 = arith.constant 1 : index
    %c0_25 = arith.constant 0 : index
    %c0_26 = arith.constant 0 : index
    %88 = vector.load %arg3[%c1_24, %c0_25, %c0_26] : memref<2x16x256xf32, #tpu.memory_space<vmem>>, vector<1x16x256xf32>
    %89 = vector.shape_cast %88 : vector<1x16x256xf32> to vector<16x256xf32>
    %90 = vector.shape_cast %87 : vector<16x256xf32> to vector<1x16x256xf32>
    tpu.vector_store %arg3[%c1_24, %c0_25, %c0_26], %90 {strides = array<i32>} : memref<2x16x256xf32, #tpu.memory_space<vmem>>, vector<1x16x256xf32>,
    return
  }
  func.func @transform_0(%arg0: i32) -> (i32, i32, i32) {
    %c0_i32 = arith.constant 0 : i32
    %c0_i32_0 = arith.constant 0 : i32
    %c0_i32_1 = arith.constant 0 : i32
    return %arg0, %c0_i32, %c0_i32_0 : i32, i32, i32
  }
  func.func @transform_1(%arg0: i32) -> (i32, i32) {
    %c0_i32 = arith.constant 0 : i32
    %c0_i32_0 = arith.constant 0 : i32
    %c0_i32_1 = arith.constant 0 : i32
    return %c0_i32, %c0_i32_0 : i32, i32
  }
  func.func @transform_2(%arg0: i32) -> (i32, i32, i32) {
    %c0_i32 = arith.constant 0 : i32
    %c0_i32_0 = arith.constant 0 : i32
    %c0_i32_1 = arith.constant 0 : i32
    return %arg0, %c0_i32, %c0_i32_0 : i32, i32, i32
  }
}

</mosaic_0001>

<bundles_post_ra>
// kernel: tpu_custom_call.1
= control target key start
LH: loop header
LB: loop body
LE: loop exit
PB: predicated region body
PF: predicated region fallthrough
CT: control target
= control target key end

     0   :  { %7 = vsyncpa [#allocation3], 0  ;;  %s507_s0 = inlined_call_operand.hbm [shape: f32[2,8,256], index: 0, kind: input, shape index: {}]   ;;  %s508_s1 = inlined_call_operand.vmem [shape: f32[16,8], index: 1, kind: input, shape index: {}]   ;;  %s509_s2 = inlined_call_operand.hbm [shape: f32[2,16,256], index: 2, kind: output, shape index: {}]  }
   0x1   :  { %8 = vsyncpa [#allocation4], 0  ;;  %s13_s11 = sshll.u32 %s507_s0, 4  ;;  %s409_s12 = smov [#allocation2]   ;;  %s14_s11 = int_to_ptr.hbm [resolvable:$true] %s13_s11 }
   0x2   :  { %s15_s13 = sshll.u32 %s409_s12, 4  ;;  %s410_s14 = smov 256   ;;  %s16_s13 = int_to_ptr.vmem [resolvable:$true] %s15_s13 }
   0x3   :  { %s411_s15 = smov 16  }
   0x4   :  { %21 = dma.hbm_to_vmem [thread:$0]  %s14_s11, 512, %s16_s13, [#allocation3], %s410_s14, %s410_s14, %s411_s15  }
   0x5   :  { %405 = dma.done.wait [#allocation3], 512  }
   0x6   :  { %406 = vsyncadd [#allocation3], 4294966784  ;;  %vm32_vm0 = vcmask 64512   ;;  %v30_v0 = vld [vmem:[#allocation2] sm:$0xff]  ;;  %v31_v1 = vld [vmem:[#allocation2 + $0x8] sm:$0xff]  ;;  %v412_v30 = vmov 0  }
   0x7   :  { %v28_v2 = vld [vmem:[%s508_s1] sm:$0xff]  ;;  %54 = vmatpush.msra.mxu0 %v30_v0  ;;  %77 = vmatpush.msra.mxu1 %v31_v1  ;;  %v178_v3 = vld [vmem:[#allocation2 + $0x10] sm:$0xff]  ;;  %v179_v4 = vld [vmem:[#allocation2 + $0x18] sm:$0xff]  ;;  %vm137_vm1 = vcmask 1043456   ;;  %s324_s22 = sshll.u32 %s509_s2, 4  ;;  %s325_s22 = int_to_ptr.hbm [resolvable:$true] %s324_s22 }
   0x8   :  { %337 = vmatmul.msk.f32.vlgmr.msra.gmra.mxu0 %vm32_vm0, %v28_v2  ;;  %339 = vmatmul.msk.f32.vlgmr.msra.gmra.mxu1 %vm32_vm0, %v28_v2  ;;  %v29_v5 = vld [vmem:[%s508_s1 + $0x8] sm:$0xff]  ;;  %s413_s1 = smov [#allocation5]  }
   0x9   :  { %195 = vmatpush.msra.mxu2 %v178_v3  ;;  %218 = vmatpush.msra.mxu3 %v179_v4  ;;  %s322_s19 = sshll.u32 %s413_s1, 4  ;;  %s323_s19 = int_to_ptr.vmem [resolvable:$true] %s322_s19 }
   0xa   :  { %341 = vmatmul.msk.f32.vlgmr.msra.gmra.mxu2 %vm32_vm0, %v28_v2  ;;  %343 = vmatmul.msk.f32.vlgmr.msra.gmra.mxu3 %vm32_vm0, %v28_v2 }
   0xb   :  { %350 = vset.pattern.permute.xlu2 %v412_v30  ;;  %351 = vset.pattern.permute.xlu0 %v412_v30 }
   0xc   :  { %352 = vset.pattern.permute.xlu1 %v412_v30 }
  0x10   :  { %338 = vmatmul.msk.f32.gmra.mxu0 %vm32_vm0, %v29_v5  ;;  %340 = vmatmul.msk.f32.gmra.mxu1 %vm32_vm0, %v29_v5 }
  0x12   :  { %342 = vmatmul.msk.f32.gmra.mxu2 %vm32_vm0, %v29_v5  ;;  %344 = vmatmul.msk.f32.gmra.mxu3 %vm32_vm0, %v29_v5 }
  0x85   :  { %v449_v6 = vpop.f32.mrf.mxu0  ;;  %v451_v7 = vpop.f32.mrf.mxu1 }
  0x86   :  { %v85_v8 = vadd.f32 %v451_v7, %v449_v6  ;;  %v91_v9 = vmul.f32 %v449_v6, %v449_v6  ;;  %v92_v10 = vmul.f32 %v451_v7, %v451_v7 }
  0x88   :  { %86 = vadd.xlane.f32.xlu0 %v85_v8  ;;  %v95_v11 = vadd.f32 %v92_v10, %v91_v9 }
  0x8a   :  { %96 = vadd.xlane.f32.xlu1 %v95_v11 }
  0x8d   :  { %v459_v12 = vpop.f32.mrf.mxu0  ;;  %v461_v13 = vpop.f32.mrf.mxu1 }
  0x8e   :  { %v463_v14 = vpop.f32.mrf.mxu2  ;;  %v465_v15 = vpop.f32.mrf.mxu3  ;;  %v88_v16 = vadd.f32 %v461_v13, %v459_v12  ;;  %v93_v20 = vmul.f32 %v459_v12, %v459_v12  ;;  %v94_v21 = vmul.f32 %v461_v13, %v461_v13 }
  0x8f   :  { %v226_v17 = vadd.f32 %v465_v15, %v463_v14  ;;  %v232_v18 = vmul.f32 %v463_v14, %v463_v14  ;;  %v233_v19 = vmul.f32 %v465_v15, %v465_v15 }
  0x90   :  { %89 = vadd.xlane.f32.xlu2 %v88_v16  ;;  %v98_v23 = vadd.f32 %v94_v21, %v93_v20 }
  0x91   :  { %227 = vadd.xlane.f32.xlu0 %v226_v17  ;;  %v236_v22 = vadd.f32 %v233_v19, %v232_v18 }
  0x93   :  { %237 = vadd.xlane.f32.xlu1 %v236_v22 }
  0x96   :  { %v479_v24 = vpop.f32.mrf.mxu2  ;;  %v481_v25 = vpop.f32.mrf.mxu3 }
  0x97   :  { %v234_v26 = vmul.f32 %v479_v24, %v479_v24  ;;  %v235_v27 = vmul.f32 %v481_v25, %v481_v25  ;;  %v229_v28 = vadd.f32 %v481_v25, %v479_v24 }
  0x99   :  { %99 = vadd.xlane.f32.xlu0 %v98_v23  ;;  %230 = vadd.xlane.f32.xlu2 %v229_v28  ;;  %v239_v29 = vadd.f32 %v235_v27, %v234_v26 }
  0x9b   :  { %240 = vadd.xlane.f32.xlu1 %v239_v29 }
  0xfb   :  { %v87_v31 = vpop.xlane.xlu0 %86 }
  0xfc   :  { %v102_v33 = vrot.slane %v87_v31, 4 }
  0xfd   :  { %v97_v32 = vpop.xlane.xlu1 %96 }
  0xfe   :  { %v104_v34 = vadd.f32 %v102_v33, %v87_v31  ;;  %v111_v41 = vrot.slane %v97_v32, 4 }
 0x100   :  { %v113_v46 = vadd.f32 %v111_v41, %v97_v32 }
 0x103   :  { %v90_v35 = vpop.xlane.xlu2 %89 }
 0x104   :  { %v228_v36 = vpop.xlane.xlu0 %227  ;;  %v105_v37 = vadd.f32 %v104_v34, %v90_v35  ;;  %v107_v38 = vrot.slane %v90_v35, 4 }
 0x105   :  { %v243_v42 = vrot.slane %v228_v36, 4 }
 0x106   :  { %v109_v39 = vadd.f32 %v107_v38, %v105_v37  ;;  %v238_v40 = vpop.xlane.xlu1 %237 }
 0x107   :  { %v252_v44 = vrot.slane %v238_v40, 4  ;;  %v245_v47 = vadd.f32 %v243_v42, %v228_v36 }
 0x108   :  { %v119_v43 = vmul.f32 0.0009765625, %v109_v39 }
 0x109   :  { %v254_v48 = vadd.f32 %v252_v44, %v238_v40 }
 0x10a   :  { %v135_v45 = vrot.slane %v119_v43, 4  ;;  %v121_v62 = vmul.f32 %v119_v43, %v119_v43 }
 0x10c   :  { %v100_v49 = vpop.xlane.xlu0 %99  ;;  %v231_v50 = vpop.xlane.xlu2 %230  ;;  %v138_v51 = vsel %vm137_vm1, %v119_v43, %v135_v45 }
 0x10d   :  { %v114_v52 = vadd.f32 %v113_v46, %v100_v49  ;;  %v116_v53 = vrot.slane %v100_v49, 4  ;;  %v246_v54 = vadd.f32 %v245_v47, %v231_v50  ;;  %v248_v55 = vrot.slane %v231_v50, 4  ;;  %145 = vperm.xlu2 %350, %v138_v51  }
 0x10e   :  { %v241_v56 = vpop.xlane.xlu1 %240 }
 0x10f   :  { %v118_v57 = vadd.f32 %v116_v53, %v114_v52  ;;  %v250_v58 = vadd.f32 %v248_v55, %v246_v54  ;;  %v255_v59 = vadd.f32 %v254_v48, %v241_v56  ;;  %v257_v60 = vrot.slane %v241_v56, 4 }
 0x111   :  { %v120_v61 = vmul.f32 0.0009765625, %v118_v57  ;;  %v260_v63 = vmul.f32 0.0009765625, %v250_v58  ;;  %v259_v0 = vadd.f32 %v257_v60, %v255_v59 }
 0x113   :  { %v122_v1 = vsub.f32 %v120_v61, %v121_v62  ;;  %v261_v2 = vmul.f32 0.0009765625, %v259_v0  ;;  %v262_v3 = vmul.f32 %v260_v63, %v260_v63  ;;  %v276_v4 = vrot.slane %v260_v63, 4 }
 0x115   :  { %v123_v5 = vadd.f32 1e-05, %v122_v1  ;;  %v263_v8 = vsub.f32 %v261_v2, %v262_v3  ;;  %v278_v9 = vsel %vm137_vm1, %v260_v63, %v276_v4 }
 0x116   :  { %285 = vperm.xlu0 %351, %v278_v9  }
 0x117   :  { %353 = vrsqrt.f32 %v123_v5  ;;  %v264_v10 = vadd.f32 1e-05, %v263_v8  ;;  %vm130_vm3 = vweird.f32 %v123_v5 }
 0x119   :  { %355 = vrsqrt.f32 %v264_v10  ;;  %vm271_vm6 = vweird.f32 %v264_v10 }
 0x11d   :  { %v354_v11 = vpop.eup %353 }
 0x11e   :  { %v125_v16 = vmul.f32 %v354_v11, %v123_v5  ;;  %vm131_vm2 = vweird.f32 %v354_v11 }
 0x11f   :  { %v356_v17 = vpop.eup %355  ;;  %vm132_vm5 = vmor %vm130_vm3, %vm131_vm2 }
 0x120   :  { %v266_v18 = vmul.f32 %v356_v17, %v264_v10  ;;  %v126_v19 = vmul.f32 %v354_v11, %v125_v16  ;;  %vm272_vm4 = vweird.f32 %v356_v17 }
 0x121   :  { %vm273_vm7 = vmor %vm271_vm6, %vm272_vm4 }
 0x122   :  { %v127_v20 = vmul.f32 0.5, %v126_v19  ;;  %v267_v21 = vmul.f32 %v356_v17, %v266_v18 }
 0x124   :  { %v128_v22 = vsub.f32 1.5, %v127_v20  ;;  %v268_v23 = vmul.f32 0.5, %v267_v21 }
 0x126   :  { %v129_v26 = vmul.f32 %v354_v11, %v128_v22  ;;  %v269_v27 = vsub.f32 1.5, %v268_v23 }
 0x128   :  { %v133_v28 = vsel %vm132_vm5, %v354_v11, %v129_v26  ;;  %v270_v29 = vmul.f32 %v356_v17, %v269_v27 }
 0x129   :  { %v140_v30 = vrot.slane %v133_v28, 4 }
 0x12a   :  { %v274_v31 = vsel %vm273_vm7, %v356_v17, %v270_v29 }
 0x12b   :  { %v142_v32 = vsel %vm137_vm1, %v133_v28, %v140_v30  ;;  %v280_v33 = vrot.slane %v274_v31, 4 }
 0x12c   :  { %154 = vperm.xlu1 %352, %v142_v32  }
 0x12d   :  { %v282_v34 = vsel %vm137_vm1, %v274_v31, %v280_v33 }
 0x12e   :  { %294 = vperm.xlu2 %350, %v282_v34  }
 0x167   :  { %v146_v35 = vpop.permute.xlu2 %145 }
 0x168   :  { %v150_v52 = vsub.f32 %v459_v12, %v146_v35  ;;  %v151_v53 = vsub.f32 %v461_v13, %v146_v35 }
 0x188   :  { %v286_v36 = vpop.permute.xlu0 %285  ;;  %v295_v41 = vpop.permute.xlu2 %294 }
 0x189   :  { %v288_v37 = vsub.f32 %v463_v14, %v286_v36  ;;  %v289_v38 = vsub.f32 %v465_v15, %v286_v36  ;;  %v290_v39 = vsub.f32 %v479_v24, %v286_v36  ;;  %v291_v40 = vsub.f32 %v481_v25, %v286_v36 }
 0x18a   :  { %v148_v24 = vsub.f32 %v449_v6, %v146_v35  ;;  %v149_v25 = vsub.f32 %v451_v7, %v146_v35 }
 0x18b   :  { %v297_v42 = vmul.f32 %v295_v41, %v288_v37  ;;  %v298_v43 = vmul.f32 %v295_v41, %v289_v38  ;;  %v299_v44 = vmul.f32 %v295_v41, %v290_v39  ;;  %v300_v45 = vmul.f32 %v295_v41, %v291_v40 }
 0x18d   :  { %vm301_vm8 = vcmp.ge.f32.partialorder %v297_v42, 0.0  ;;  %vm302_vm9 = vcmp.ge.f32.partialorder %v298_v43, 0.0  ;;  %vm303_vm10 = vcmp.ge.f32.partialorder %v299_v44, 0.0  ;;  %vm304_vm11 = vcmp.ge.f32.partialorder %v300_v45, 0.0 }
 0x18e   :  { %v305_v46 = vmul.f32 0.2, %v297_v42  ;;  %v306_v47 = vmul.f32 0.2, %v298_v43  ;;  %v307_v48 = vmul.f32 0.2, %v299_v44 }
 0x18f   :  { %v308_v49 = vmul.f32 0.2, %v300_v45 }
 0x190   :  { %v309_v14 = vsel %vm301_vm8, %v297_v42, %v305_v46  ;;  %v310_v50 = vsel %vm302_vm9, %v298_v43, %v306_v47  ;;  %v311_v15 = vsel %vm303_vm10, %v299_v44, %v307_v48 }
 0x191   :  { %v312_v51 = vsel %vm304_vm11, %v300_v45, %v308_v49  ;;  %314 = vst [vmem:[#allocation5 + $0x20] sm:$0xff] %v309_v14 }
 0x192   :  { %315 = vst [vmem:[#allocation5 + $0x28] sm:$0xff] %v310_v50 }
 0x193   :  { %316 = vst [vmem:[#allocation5 + $0x30] sm:$0xff] %v311_v15 }
 0x194   :  { %317 = vst [vmem:[#allocation5 + $0x38] sm:$0xff] %v312_v51 }
 0x19e   :  { %v155_v54 = vpop.permute.xlu1 %154 }
 0x19f   :  { %v157_v55 = vmul.f32 %v155_v54, %v148_v24  ;;  %v158_v56 = vmul.f32 %v155_v54, %v149_v25  ;;  %v159_v57 = vmul.f32 %v155_v54, %v150_v52  ;;  %v160_v58 = vmul.f32 %v155_v54, %v151_v53 }
 0x1a1   :  { %vm161_vm12 = vcmp.ge.f32.partialorder %v157_v55, 0.0  ;;  %vm162_vm13 = vcmp.ge.f32.partialorder %v158_v56, 0.0  ;;  %vm163_vm14 = vcmp.ge.f32.partialorder %v159_v57, 0.0  ;;  %vm164_vm15 = vcmp.ge.f32.partialorder %v160_v58, 0.0 }
 0x1a2   :  { %v165_v59 = vmul.f32 0.2, %v157_v55  ;;  %v166_v60 = vmul.f32 0.2, %v158_v56  ;;  %v167_v61 = vmul.f32 0.2, %v159_v57 }
 0x1a3   :  { %v168_v62 = vmul.f32 0.2, %v160_v58 }
 0x1a4   :  { %v169_v6 = vsel %vm161_vm12, %v157_v55, %v165_v59  ;;  %v170_v7 = vsel %vm162_vm13, %v158_v56, %v166_v60  ;;  %v171_v12 = vsel %vm163_vm14, %v159_v57, %v167_v61 }
 0x1a5   :  { %v172_v13 = vsel %vm164_vm15, %v160_v58, %v168_v62  ;;  %173 = vst [vmem:[#allocation5] sm:$0xff] %v169_v6 }
 0x1a6   :  { %174 = vst [vmem:[#allocation5 + $0x8] sm:$0xff] %v170_v7 }
 0x1a7   :  { %175 = vst [vmem:[#allocation5 + $0x10] sm:$0xff] %v171_v12 }
 0x1a8   :  { %176 = vst [vmem:[#allocation5 + $0x18] sm:$0xff] %v172_v13 }
 0x1a9   :  { %330 = dma.vmem_to_hbm [thread:$0]  %s323_s19, 1024, %s325_s22, [#allocation4], %s410_s14, %s410_s14, %s411_s15  }
 0x1aa   :  { %407 = dma.done.wait [#allocation4], 1024  }
 0x1ab   :  { %408 = vsyncadd [#allocation4], 4294966272 }
 0x1ac   :  { %335 = vsyncpa [#allocation3], 1 }
 0x1ad   :  { %336 = vsyncpa [#allocation4], 1 }

</bundles_post_ra>
